<compile_context>
chip_gen: v7x
topology: tpu7x:2x2x1
jax: 0.10.0
libtpu: 0.0.40
codegen_flags: <defaults>
</compile_context>

<pallas_src>
import functools

import jax
import jax.numpy as jnp
from jax.experimental import pallas as pl
from jax.experimental.pallas import tpu as pltpu

LANE = 128  # lane-dense feature padding (v5e MXU-native; fine on v6e/v7x)


def _round_up(x, m):
    return (x + m - 1) // m * m


def _pad2(a, rows, cols):
    return jnp.pad(a, ((0, rows - a.shape[0]), (0, cols - a.shape[1])))


def _leaky_relu(x, slope=0.2):
    # max(x, slope*x) == LeakyReLU(slope) for 0 <= slope <= 1 (mul+max, 2 VALU ops).
    return jnp.maximum(x, slope * x)


# --------------------------------------------------------------------------- #
# Kernel: one batch tile per grid step; all weights resident in VMEM.
# --------------------------------------------------------------------------- #
def img2text_mlp_kernel(x_ref, w1_ref, b1_ref, w2_ref, b2_ref, wo_ref, bo_ref,
                        o_ref):
    cdt = w1_ref.dtype  # compute dtype (bf16); f32 MXU accumulation below.

    # In-kernel cast of the activation tile (hidden under the MXU).
    x = x_ref[...].astype(cdt)

    # layer 0: Linear(E -> M) + Dropout(identity) + LeakyReLU
    h = jnp.dot(x, w1_ref[...], preferred_element_type=jnp.float32) + b1_ref[...]
    h = _leaky_relu(h)

    # layer 1: Linear(M -> M) + Dropout(identity) + LeakyReLU
    h = jnp.dot(h.astype(cdt), w2_ref[...],
                preferred_element_type=jnp.float32) + b2_ref[...]
    h = _leaky_relu(h)

    # fc_out: Linear(M -> O)
    out = jnp.dot(h.astype(cdt), wo_ref[...],
                  preferred_element_type=jnp.float32) + bo_ref[...]
    o_ref[...] = out.astype(o_ref.dtype)


# --------------------------------------------------------------------------- #
# One-time parameter preparation (pad to lane-dense dims, cast weights to bf16).
# Call once; reuse the result for every forward call.
# --------------------------------------------------------------------------- #
def prepare_params(params, compute_dtype=jnp.bfloat16):
    E, M = params["w1"].shape
    O = params["wo"].shape[1]
    Ep, Mp, Op = (_round_up(d, LANE) for d in (E, M, O))
    return {
        "w1": _pad2(params["w1"], Ep, Mp).astype(compute_dtype),
        "b1": _pad2(params["b1"], 1, Mp).astype(jnp.float32),
        "w2": _pad2(params["w2"], Mp, Mp).astype(compute_dtype),
        "b2": _pad2(params["b2"], 1, Mp).astype(jnp.float32),
        "wo": _pad2(params["wo"], Mp, Op).astype(compute_dtype),
        "bo": _pad2(params["bo"], 1, Op).astype(jnp.float32),
        "dims": (E, M, O),  # original (unpadded) dims, Python ints
    }


def _pick_tile_m(batch):
    if batch <= 32:
        return _round_up(batch, 16)        # single tile: grid overhead dominates
    if batch <= 1024:
        # >=2 parallel grid steps so both v7x TensorCores get work; on
        # single-TC v5e/v6e this costs one extra ~0.35us grid step.
        return _round_up(-(-batch // 2), 16)
    # Large batches: 512-row tiles (~85% of HBM roofline on v6e) and still a
    # comfortable VMEM footprint on v7x (64 MiB) for moderate middle_dim.
    return 512


@functools.partial(jax.jit, static_argnames=("out_dim", "tile_m"))
def _forward(x, w1, b1, w2, b2, wo, bo, *, out_dim, tile_m):
    B, E = x.shape
    Ep, Mp = w1.shape
    Op = wo.shape[1]

    padB = _round_up(B, tile_m)
    grid = (padB // tile_m,)

    # Only materialize a padded activation slab when padding is actually needed.
    if (padB, Ep) != (B, E):
        x = _pad2(x, padB, Ep)

    # Resident weights/biases: constant index_map -> single-buffered.
    def resident(shape):
        return pl.BlockSpec(shape, lambda i: (0, 0),
                            pipeline_mode=pl.Buffered(1))

    # VMEM budget: single-buffered weights + biases + double-buffered x/out tiles.
    w_bytes = (w1.size + w2.size + wo.size) * w1.dtype.itemsize
    b_bytes = (b1.size + b2.size + bo.size) * 4
    io_bytes = 2 * tile_m * (Ep * x.dtype.itemsize + Op * x.dtype.itemsize)
    vmem_limit = int(min(max((w_bytes + b_bytes + io_bytes) * 1.3 + (4 << 20),
                             16 << 20), 96 << 20))

    cost = pl.CostEstimate(
        flops=2 * padB * (Ep * Mp + Mp * Mp + Mp * Op),
        transcendentals=0,
        bytes_accessed=int(padB * Ep * x.dtype.itemsize + w_bytes + b_bytes
                           + padB * Op * x.dtype.itemsize),
    )

    out_p = pl.pallas_call(
        img2text_mlp_kernel,
        out_shape=jax.ShapeDtypeStruct((padB, Op), x.dtype),
        grid_spec=pltpu.PrefetchScalarGridSpec(
            num_scalar_prefetch=0,
            grid=grid,
            in_specs=[
                pl.BlockSpec((tile_m, Ep), lambda i: (i, 0)),   # x tile (f32)
                resident((Ep, Mp)),                             # w1
                resident((1, Mp)),                              # b1
                resident((Mp, Mp)),                             # w2
                resident((1, Mp)),                              # b2
                resident((Mp, Op)),                             # wo
                resident((1, Op)),                              # bo
            ],
            out_specs=pl.BlockSpec((tile_m, Op), lambda i: (i, 0)),
        ),
        compiler_params=pltpu.CompilerParams(
            dimension_semantics=("parallel",),
            vmem_limit_bytes=vmem_limit,
        ),
        cost_estimate=cost,
    )(x, w1, b1, w2, b2, wo, bo)

    if padB == B and Op == out_dim:
        return out_p
    return out_p[:B, :out_dim]


def img2text_mlp(x, prepared, *, tile_m=None, training=False):
    """x: (B, E) float32.  `prepared` comes from prepare_params(params)."""
    if training:
        # TODO(synk): training-mode dropout (random masking) not implemented.
        raise NotImplementedError(
            "IMG2TEXT_MLP Pallas kernel is inference-only (dropout = identity).")
    _, _, out_dim = prepared["dims"]
    if tile_m is None:
        tile_m = _pick_tile_m(x.shape[0])
    return _forward(x, prepared["w1"], prepared["b1"], prepared["w2"],
                    prepared["b2"], prepared["wo"], prepared["bo"],
                    out_dim=out_dim, tile_m=tile_m)


# --------------------------------------------------------------------------- #
# Parameter init (torch nn.Linear-style uniform) + references + self-test.
# --------------------------------------------------------------------------- #
def init_params(key, embed_dim, middle_dim, output_dim):
    ks = jax.random.split(key, 6)

    def linear(kw, kb, fan_in, fan_out):
        bound = 1.0 / jnp.sqrt(fan_in)
        w = jax.random.uniform(kw, (fan_in, fan_out), jnp.float32, -bound, bound)
        b = jax.random.uniform(kb, (1, fan_out), jnp.float32, -bound, bound)
        return w, b

    w1, b1 = linear(ks[0], ks[1], embed_dim, middle_dim)
    w2, b2 = linear(ks[2], ks[3], middle_dim, middle_dim)
    wo, bo = linear(ks[4], ks[5], middle_dim, output_dim)
    return {"w1": w1, "b1": b1, "w2": w2, "b2": b2, "wo": wo, "bo": bo}


def reference_mlp(x, p, emulate_bf16=True):
    """Pure-JAX reference.  emulate_bf16=True mirrors the kernel's bf16-input /
    f32-accumulate math; emulate_bf16=False is the true f32 PyTorch math."""
    if emulate_bf16:
        cast = lambda a: a.astype(jnp.bfloat16).astype(jnp.float32)
    else:
        cast = lambda a: a
    h = _leaky_relu(cast(x) @ cast(p["w1"]) + p["b1"])
    h = _leaky_relu(cast(h) @ cast(p["w2"]) + p["b2"])
    return cast(h) @ cast(p["wo"]) + p["bo"]


if __name__ == "__main__":
    # Small shapes consistent with the module's forward (batch of feature vectors).
    batch, embed_dim, middle_dim, output_dim = 8, 32, 32, 32

    key = jax.random.PRNGKey(0)
    kx, kp = jax.random.split(key)
    x = jax.random.normal(kx, (batch, embed_dim), jnp.float32)
    params = init_params(kp, embed_dim, middle_dim, output_dim)

    prepared = prepare_params(params)          # pad + cast ONCE, reuse per call
    out = jax.block_until_ready(img2text_mlp(x, prepared))

    assert out.shape == (batch, output_dim)
    # Exact-math check against a reference that mirrors the kernel's bf16 casts.
    ref_bf16 = reference_mlp(x, params, emulate_bf16=True)
    assert jnp.allclose(out, ref_bf16, atol=1e-2, rtol=1e-2), "mismatch vs bf16 reference"
    # Looser check against the true f32 PyTorch math (bf16 rounding tolerance).
    ref_f32 = reference_mlp(x, params, emulate_bf16=False)
    assert jnp.allclose(out, ref_f32, atol=5e-2, rtol=5e-2), "mismatch vs f32 reference"

    print("KERNEL_OK")
</pallas_src>

<mosaic_0001>
module attributes {stable_mosaic.version = 11 : i64} {
  func.func @img2text_mlp_kernel(%arg0: i32, %arg1: memref<16x128xf32, #tpu.memory_space<vmem>>, %arg2: memref<128x128xbf16, #tpu.memory_space<vmem>>, %arg3: memref<1x128xf32, #tpu.memory_space<vmem>>, %arg4: memref<128x128xbf16, #tpu.memory_space<vmem>>, %arg5: memref<1x128xf32, #tpu.memory_space<vmem>>, %arg6: memref<128x128xbf16, #tpu.memory_space<vmem>>, %arg7: memref<1x128xf32, #tpu.memory_space<vmem>>, %arg8: memref<16x128xf32, #tpu.memory_space<vmem>>) attributes {dimension_semantics = [#tpu.dimension_semantics<parallel>], iteration_bounds = array<i64: 1>, scalar_prefetch = 0 : i64, scratch_operands = 0 : i64, tpu.core_type = #tpu.core_type<tc>, window_params = [{transform_indices = @transform_0, window_bounds = array<i64: 16, 128>}, {pipeline_mode = #tpu.pipeline_mode<synchronous>, transform_indices = @transform_1, window_bounds = array<i64: 128, 128>}, {pipeline_mode = #tpu.pipeline_mode<synchronous>, transform_indices = @transform_2, window_bounds = array<i64: 1, 128>}, {pipeline_mode = #tpu.pipeline_mode<synchronous>, transform_indices = @transform_3, window_bounds = array<i64: 128, 128>}, {pipeline_mode = #tpu.pipeline_mode<synchronous>, transform_indices = @transform_4, window_bounds = array<i64: 1, 128>}, {pipeline_mode = #tpu.pipeline_mode<synchronous>, transform_indices = @transform_5, window_bounds = array<i64: 128, 128>}, {pipeline_mode = #tpu.pipeline_mode<synchronous>, transform_indices = @transform_6, window_bounds = array<i64: 1, 128>}, {transform_indices = @transform_7, window_bounds = array<i64: 16, 128>}]} {
    %c0 = arith.constant 0 : index
    %c0_0 = arith.constant 0 : index
    %0 = vector.load %arg1[%c0, %c0_0] : memref<16x128xf32, #tpu.memory_space<vmem>>, vector<16x128xf32>
    %1 = arith.truncf %0 : vector<16x128xf32> to vector<16x128xbf16>
    %c0_1 = arith.constant 0 : index
    %c0_2 = arith.constant 0 : index
    %2 = vector.load %arg2[%c0_1, %c0_2] : memref<128x128xbf16, #tpu.memory_space<vmem>>, vector<128x128xbf16>
    %cst = arith.constant dense<0.000000e+00> : vector<16x128xf32>
    %3 = tpu.matmul %1, %2, %cst {dimension_numbers = #tpu.dot_dimension_numbers<[1], [0], [0], [1], [0, 0, 1, 1], [], []>} : vector<16x128xbf16>, vector<128x128xbf16>, vector<16x128xf32> -> vector<16x128xf32>
    %c0_3 = arith.constant 0 : index
    %c0_4 = arith.constant 0 : index
    %4 = vector.load %arg3[%c0_3, %c0_4] : memref<1x128xf32, #tpu.memory_space<vmem>>, vector<1x128xf32>
    %5 = vector.broadcast %4 : vector<1x128xf32> to vector<16x128xf32>
    %6 = arith.addf %3, %5 : vector<16x128xf32>
    %cst_5 = arith.constant 2.000000e-01 : f32
    %7 = vector.broadcast %cst_5 : f32 to vector<16x128xf32>
    %8 = arith.mulf %7, %6 : vector<16x128xf32>
    %9 = arith.maximumf %6, %8 : vector<16x128xf32>
    %10 = arith.truncf %9 : vector<16x128xf32> to vector<16x128xbf16>
    %c0_6 = arith.constant 0 : index
    %c0_7 = arith.constant 0 : index
    %11 = vector.load %arg4[%c0_6, %c0_7] : memref<128x128xbf16, #tpu.memory_space<vmem>>, vector<128x128xbf16>
    %cst_8 = arith.constant dense<0.000000e+00> : vector<16x128xf32>
    %12 = tpu.matmul %10, %11, %cst_8 {dimension_numbers = #tpu.dot_dimension_numbers<[1], [0], [0], [1], [0, 0, 1, 1], [], []>} : vector<16x128xbf16>, vector<128x128xbf16>, vector<16x128xf32> -> vector<16x128xf32>
    %c0_9 = arith.constant 0 : index
    %c0_10 = arith.constant 0 : index
    %13 = vector.load %arg5[%c0_9, %c0_10] : memref<1x128xf32, #tpu.memory_space<vmem>>, vector<1x128xf32>
    %14 = vector.broadcast %13 : vector<1x128xf32> to vector<16x128xf32>
    %15 = arith.addf %12, %14 : vector<16x128xf32>
    %cst_11 = arith.constant 2.000000e-01 : f32
    %16 = vector.broadcast %cst_11 : f32 to vector<16x128xf32>
    %17 = arith.mulf %16, %15 : vector<16x128xf32>
    %18 = arith.maximumf %15, %17 : vector<16x128xf32>
    %19 = arith.truncf %18 : vector<16x128xf32> to vector<16x128xbf16>
    %c0_12 = arith.constant 0 : index
    %c0_13 = arith.constant 0 : index
    %20 = vector.load %arg6[%c0_12, %c0_13] : memref<128x128xbf16, #tpu.memory_space<vmem>>, vector<128x128xbf16>
    %cst_14 = arith.constant dense<0.000000e+00> : vector<16x128xf32>
    %21 = tpu.matmul %19, %20, %cst_14 {dimension_numbers = #tpu.dot_dimension_numbers<[1], [0], [0], [1], [0, 0, 1, 1], [], []>} : vector<16x128xbf16>, vector<128x128xbf16>, vector<16x128xf32> -> vector<16x128xf32>
    %c0_15 = arith.constant 0 : index
    %c0_16 = arith.constant 0 : index
    %22 = vector.load %arg7[%c0_15, %c0_16] : memref<1x128xf32, #tpu.memory_space<vmem>>, vector<1x128xf32>
    %23 = vector.broadcast %22 : vector<1x128xf32> to vector<16x128xf32>
    %24 = arith.addf %21, %23 : vector<16x128xf32>
    %c0_17 = arith.constant 0 : index
    %c0_18 = arith.constant 0 : index
    %25 = vector.load %arg8[%c0_17, %c0_18] : memref<16x128xf32, #tpu.memory_space<vmem>>, vector<16x128xf32>
    tpu.vector_store %arg8[%c0_17, %c0_18], %24 {strides = array<i32>} : memref<16x128xf32, #tpu.memory_space<vmem>>, vector<16x128xf32>,
    return
  }
  func.func @transform_0(%arg0: i32) -> (i32, i32) {
    %c0_i32 = arith.constant 0 : i32
    %c0_i32_0 = arith.constant 0 : i32
    return %arg0, %c0_i32 : i32, i32
  }
  func.func @transform_1(%arg0: i32) -> (i32, i32) {
    %c0_i32 = arith.constant 0 : i32
    %c0_i32_0 = arith.constant 0 : i32
    %c0_i32_1 = arith.constant 0 : i32
    return %c0_i32, %c0_i32_0 : i32, i32
  }
  func.func @transform_2(%arg0: i32) -> (i32, i32) {
    %c0_i32 = arith.constant 0 : i32
    %c0_i32_0 = arith.constant 0 : i32
    %c0_i32_1 = arith.constant 0 : i32
    return %c0_i32, %c0_i32_0 : i32, i32
  }
  func.func @transform_3(%arg0: i32) -> (i32, i32) {
    %c0_i32 = arith.constant 0 : i32
    %c0_i32_0 = arith.constant 0 : i32
    %c0_i32_1 = arith.constant 0 : i32
    return %c0_i32, %c0_i32_0 : i32, i32
  }
  func.func @transform_4(%arg0: i32) -> (i32, i32) {
    %c0_i32 = arith.constant 0 : i32
    %c0_i32_0 = arith.constant 0 : i32
    %c0_i32_1 = arith.constant 0 : i32
    return %c0_i32, %c0_i32_0 : i32, i32
  }
  func.func @transform_5(%arg0: i32) -> (i32, i32) {
    %c0_i32 = arith.constant 0 : i32
    %c0_i32_0 = arith.constant 0 : i32
    %c0_i32_1 = arith.constant 0 : i32
    return %c0_i32, %c0_i32_0 : i32, i32
  }
  func.func @transform_6(%arg0: i32) -> (i32, i32) {
    %c0_i32 = arith.constant 0 : i32
    %c0_i32_0 = arith.constant 0 : i32
    %c0_i32_1 = arith.constant 0 : i32
    return %c0_i32, %c0_i32_0 : i32, i32
  }
  func.func @transform_7(%arg0: i32) -> (i32, i32) {
    %c0_i32 = arith.constant 0 : i32
    %c0_i32_0 = arith.constant 0 : i32
    return %arg0, %c0_i32 : i32, i32
  }
}

</mosaic_0001>

<bundles_post_ra>
// kernel: _forward.1
= control target key start
LH: loop header
LB: loop body
LE: loop exit
PB: predicated region body
PF: predicated region fallthrough
CT: control target
= control target key end

     0   :  { %12 = vsyncpa [#allocation3], 0  ;;  %s790_s0 = inlined_call_operand.vmem [shape: f32[16,128], index: 0, kind: input, shape index: {}]   ;;  %s791_s1 = inlined_call_operand.hbm [shape: bf16[128,128], index: 1, kind: input, shape index: {}]   ;;  %s792_s2 = inlined_call_operand.vmem [shape: f32[1,128], index: 2, kind: input, shape index: {}]   ;;  %s793_s3 = inlined_call_operand.hbm [shape: bf16[128,128], index: 3, kind: input, shape index: {}]   ;;  %s794_s4 = inlined_call_operand.vmem [shape: f32[1,128], index: 4, kind: input, shape index: {}]   ;;  %s795_s5 = inlined_call_operand.hbm [shape: bf16[128,128], index: 5, kind: input, shape index: {}]   ;;  %s796_s6 = inlined_call_operand.vmem [shape: f32[1,128], index: 6, kind: input, shape index: {}]   ;;  %s797_s7 = inlined_call_operand.vmem [shape: f32[16,128], index: 7, kind: output, shape index: {}]  }
   0x1   :  { %13 = vsyncpa [#allocation5], 0  ;;  %s640_s24 = smov [#allocation4]   ;;  %s641_s26 = smov [#allocation2]  }
   0x2   :  { %s35_s25 = sshll.u32 %s640_s24, 4  ;;  %s21_s27 = sshll.u32 %s641_s26, 4  ;;  %s36_s25 = int_to_ptr.vmem [resolvable:$true] %s35_s25  ;;  %s687_s27 = int_to_ptr.vmem [resolvable:$true] %s21_s27 }
   0x3   :  { %s570_s30 = scalar_lea.hbm %s793_s3, 1024 }
   0x4   :  { %p571_p0 = scmp.ne.s32.totalorder %s793_s3, %s570_s30  ;;  %p574_p1 = scmp.lt.u32.totalorder %s570_s30, %s793_s3 }
   0x6   :  { %p576_p2 = pnand %p574_p1, %p571_p0 }
   0x8   :  { %579 = shalt.err (!%p576_p2)
}
   0x9   :  { %s580_s12 = scalar_lea.vmem %s36_s25, 1024  ;;  %p585_p4 = scmp.lt.s32.totalorder %s36_s25, %s36_s25 }
   0xa   :  { %p581_p3 = scmp.ne.s32.totalorder %s36_s25, %s580_s12  ;;  %p586_p5 = scmp.lt.s32.totalorder %s580_s12, %s580_s12 }
   0xc   :  { %p587_p6 = por %p586_p5, %p585_p4 }
   0xe   :  { %p588_p7 = pnand %p587_p6, %p581_p3 }
  0x10   :  { %591 = shalt.err (!%p588_p7)
}
  0x11   :  { %s642_s13 = smov 64   ;;  %s643_s14 = smov 4  }
  0x12   :  { %41 = dma.hbm_to_vmem [thread:$0]  %s793_s3, 1024, %s36_s25, [#allocation5], %s642_s13, %s642_s13, %s643_s14  }
  0x13   :  { %s592_s19 = scalar_lea.hbm %s791_s1, 1024 }
  0x14   :  { %p593_p8 = scmp.ne.s32.totalorder %s791_s1, %s592_s19  ;;  %p596_p9 = scmp.lt.u32.totalorder %s592_s19, %s791_s1 }
  0x16   :  { %p598_p10 = pnand %p596_p9, %p593_p8 }
  0x18   :  { %601 = shalt.err (!%p598_p10)
}
  0x19   :  { %s602_s24 = scalar_lea.vmem %s687_s27, 1024  ;;  %p607_p12 = scmp.lt.s32.totalorder %s687_s27, %s687_s27 }
  0x1a   :  { %p603_p11 = scmp.ne.s32.totalorder %s687_s27, %s602_s24  ;;  %p608_p13 = scmp.lt.s32.totalorder %s602_s24, %s602_s24 }
  0x1c   :  { %p609_p0 = por %p608_p13, %p607_p12 }
  0x1e   :  { %p610_p1 = pnand %p609_p0, %p603_p11 }
  0x20   :  { %613 = shalt.err (!%p610_p1)
}
  0x21   :  { %27 = dma.hbm_to_vmem [thread:$0]  %s791_s1, 1024, %s687_s27, [#allocation3], %s642_s13, %s642_s13, %s643_s14  }
  0x22   :  { %s644_s26 = smov [#allocation6]   ;;  %s614_s8 = scalar_lea.hbm %s795_s5, 1024 }
  0x23   :  { %s49_s28 = sshll.u32 %s644_s26, 4  ;;  %p615_p2 = scmp.ne.s32.totalorder %s795_s5, %s614_s8  ;;  %s50_s28 = int_to_ptr.vmem [resolvable:$true] %s49_s28 }
  0x24   :  { %p618_p3 = scmp.lt.u32.totalorder %s614_s8, %s795_s5 }
  0x26   :  { %p620_p4 = pnand %p618_p3, %p615_p2 }
  0x28   :  { %623 = shalt.err (!%p620_p4)
}
  0x29   :  { %s624_s15 = scalar_lea.vmem %s50_s28, 1024  ;;  %p629_p6 = scmp.lt.s32.totalorder %s50_s28, %s50_s28 }
  0x2a   :  { %p625_p5 = scmp.ne.s32.totalorder %s50_s28, %s624_s15  ;;  %p630_p7 = scmp.lt.s32.totalorder %s624_s15, %s624_s15 }
  0x2c   :  { %p631_p8 = por %p630_p7, %p629_p6 }
  0x2e   :  { %p632_p9 = pnand %p631_p8, %p625_p5 }
  0x30   :  { %635 = shalt.err (!%p632_p9)
}
  0x31   :  { %55 = dma.hbm_to_vmem [thread:$0]  %s795_s5, 1024, %s50_s28, [#allocation5], %s642_s13, %s642_s13, %s643_s14  }
  0x32   :  { %636 = dma.done.wait [#allocation3], 1024  }
  0x33   :  { %637 = vsyncadd [#allocation3], 4294966272 }
  0x34   :  { %638 = dma.done.wait [#allocation5], 2048  }
  0x35   :  { %639 = vsyncadd [#allocation5], 4294965248  ;;  %v645_v0 = vmov 0.0   ;;  %vm646_vm0 = vmmov 0   ;;  %v546_v1 = vld [vmem:[#allocation2] sm:$0xff]   ;;  %v547_v2 = vld [vmem:[#allocation2 + $0x8] sm:$0xff]  }
  0x36   :  { %479 = vmatprep.subr.bf16.mxu0 %v645_v0  ;;  %495 = vmatprep.mubr.msk.bf16.mxu0 %vm646_vm0, %v645_v0  ;;  %v548_v3 = vld [vmem:[#allocation2 + $0x10] sm:$0xff]   ;;  %v554_v4 = vld [vmem:[#allocation4] sm:$0xff]   ;;  %v549_v5 = vld [vmem:[#allocation2 + $0x18] sm:$0xff]  }
  0x37   :  { %499 = vmatprep.subr.bf16.mxu1 %v645_v0  ;;  %515 = vmatprep.mubr.msk.bf16.mxu1 %vm646_vm0, %v645_v0  ;;  %v555_v6 = vld [vmem:[#allocation4 + $0x8] sm:$0xff]   ;;  %v550_v7 = vld [vmem:[#allocation2 + $0x20] sm:$0xff]   ;;  %v556_v8 = vld [vmem:[#allocation4 + $0x10] sm:$0xff]  }
  0x38   :  { %480 = vmatpush3.bf16.msra.mxu0 %v546_v1  ;;  %500 = vmatpush3.bf16.msra.mxu1 %v554_v4  ;;  %v551_v9 = vld [vmem:[#allocation2 + $0x28] sm:$0xff]   ;;  %v557_v10 = vld [vmem:[#allocation4 + $0x18] sm:$0xff]   ;;  %v552_v11 = vld [vmem:[#allocation2 + $0x30] sm:$0xff]  }
  0x39   :  { %481 = vmatprep.subr.bf16.mxu0 %v645_v0  ;;  %501 = vmatprep.subr.bf16.mxu1 %v645_v0  ;;  %v558_v12 = vld [vmem:[#allocation4 + $0x20] sm:$0xff]   ;;  %v553_v13 = vld [vmem:[#allocation2 + $0x38] sm:$0xff]   ;;  %v69_v15 = vld [vmem:[%s790_s0 + $0x8] sm:$0xff] }
  0x3a   :  { %v68_v14 = vld [vmem:[%s790_s0] sm:$0xff]  ;;  %v559_v17 = vld [vmem:[#allocation4 + $0x28] sm:$0xff]   ;;  %v560_v18 = vld [vmem:[#allocation4 + $0x30] sm:$0xff]  }
  0x3b   :  { %v70_v16 = vpack.c.bf16 %v69_v15, %v68_v14  ;;  %v561_v19 = vld [vmem:[#allocation4 + $0x38] sm:$0xff]   ;;  %v562_v20 = vld [vmem:[#allocation6] sm:$0xff]   ;;  %v563_v21 = vld [vmem:[#allocation6 + $0x8] sm:$0xff]  }
  0x3c   :  { %482 = vmatpush3.bf16.msra.mxu0 %v547_v2  ;;  %502 = vmatpush3.bf16.msra.mxu1 %v555_v6  ;;  %v564_v22 = vld [vmem:[#allocation6 + $0x10] sm:$0xff]   ;;  %v565_v23 = vld [vmem:[#allocation6 + $0x18] sm:$0xff]   ;;  %v566_v24 = vld [vmem:[#allocation6 + $0x20] sm:$0xff]  }
  0x3d   :  { %483 = vmatprep.subr.bf16.mxu0 %v645_v0  ;;  %503 = vmatprep.subr.bf16.mxu1 %v645_v0  ;;  %v425_v25 = vld [vmem:[%s792_s2] ss:$0 sm:$0xff]  ;;  %v567_v37 = vld [vmem:[#allocation6 + $0x28] sm:$0xff]   ;;  %v568_v38 = vld [vmem:[#allocation6 + $0x30] sm:$0xff]  }
  0x3e   :  { %v569_v39 = vld [vmem:[#allocation6 + $0x38] sm:$0xff]   ;;  %v434_v40 = vld [vmem:[%s794_s4] ss:$0 sm:$0xff] }
  0x3f   :  { %v443_v52 = vld [vmem:[%s796_s6] ss:$0 sm:$0xff] }
  0x40   :  { %484 = vmatpush3.bf16.msra.mxu0 %v548_v3  ;;  %504 = vmatpush3.bf16.msra.mxu1 %v556_v8 }
  0x41   :  { %485 = vmatprep.subr.bf16.mxu0 %v645_v0  ;;  %505 = vmatprep.subr.bf16.mxu1 %v645_v0 }
  0x44   :  { %486 = vmatpush3.bf16.msra.mxu0 %v549_v5  ;;  %506 = vmatpush3.bf16.msra.mxu1 %v557_v10 }
  0x45   :  { %487 = vmatprep.subr.bf16.mxu0 %v645_v0  ;;  %507 = vmatprep.subr.bf16.mxu1 %v645_v0 }
  0x48   :  { %488 = vmatpush3.bf16.msra.mxu0 %v550_v7  ;;  %508 = vmatpush3.bf16.msra.mxu1 %v558_v12 }
  0x49   :  { %489 = vmatprep.subr.bf16.mxu0 %v645_v0  ;;  %509 = vmatprep.subr.bf16.mxu1 %v645_v0 }
  0x4c   :  { %490 = vmatpush3.bf16.msra.mxu0 %v551_v9  ;;  %510 = vmatpush3.bf16.msra.mxu1 %v559_v17 }
  0x4d   :  { %491 = vmatprep.subr.bf16.mxu0 %v645_v0  ;;  %511 = vmatprep.subr.bf16.mxu1 %v645_v0 }
  0x50   :  { %492 = vmatpush3.bf16.msra.mxu0 %v552_v11  ;;  %512 = vmatpush3.bf16.msra.mxu1 %v560_v18 }
  0x51   :  { %493 = vmatprep.subr.bf16.mxu0 %v645_v0  ;;  %513 = vmatprep.subr.bf16.mxu1 %v645_v0 }
  0x54   :  { %494 = vmatpush3.bf16.msra.mxu0 %v553_v13  ;;  %514 = vmatpush3.bf16.msra.mxu1 %v561_v19 }
  0x55   :  { %519 = vmatprep.subr.bf16.mxu0 %v645_v0 }
  0x57   :  { %496 = vmatmul.mubr.bf16.vlgmr.msra.gmra.mrb[0].mxu0 %v70_v16 }
  0x58   :  { %535 = vmatprep.mubr.msk.bf16.mxu0 %vm646_vm0, %v645_v0  ;;  %520 = vmatpush3.bf16.msra.mxu0 %v562_v20 }
  0x59   :  { %521 = vmatprep.subr.bf16.mxu0 %v645_v0 }
  0x5c   :  { %522 = vmatpush3.bf16.msra.mxu0 %v563_v21 }
  0x5d   :  { %523 = vmatprep.subr.bf16.mxu0 %v645_v0 }
  0x60   :  { %524 = vmatpush3.bf16.msra.mxu0 %v564_v22 }
  0x61   :  { %525 = vmatprep.subr.bf16.mxu0 %v645_v0 }
  0x64   :  { %526 = vmatpush3.bf16.msra.mxu0 %v565_v23 }
  0x65   :  { %527 = vmatprep.subr.bf16.mxu0 %v645_v0 }
  0x68   :  { %528 = vmatpush3.bf16.msra.mxu0 %v566_v24 }
  0x69   :  { %529 = vmatprep.subr.bf16.mxu0 %v645_v0 }
  0x6c   :  { %530 = vmatpush3.bf16.msra.mxu0 %v567_v37 }
  0x6d   :  { %531 = vmatprep.subr.bf16.mxu0 %v645_v0 }
  0x70   :  { %532 = vmatpush3.bf16.msra.mxu0 %v568_v38 }
  0x71   :  { %533 = vmatprep.subr.bf16.mxu0 %v645_v0 }
  0x74   :  { %534 = vmatpush3.bf16.msra.mxu0 %v569_v39 }
 0x12a   :  { %v176_v26 = vpop.f32.mrb[0].mxu0 }
 0x12b   :  { %v177_v27 = vadd.f32 %v425_v25, %v176_v26  ;;  %v497_v28 = vpop.f32.mrb[1].mxu0 }
 0x12c   :  { %v179_v29 = vpop.f32.mrb[2].mxu0 }
 0x12d   :  { %v183_v30 = vmul.f32 0.2, %v177_v27  ;;  %v180_v31 = vadd.f32 %v425_v25, %v179_v29  ;;  %v498_v32 = vpop.f32.mrb[3].mxu0 }
 0x12f   :  { %v184_v33 = vmul.f32 0.2, %v180_v31  ;;  %v185_v34 = vmax.f32 %v177_v27, %v183_v30 }
 0x131   :  { %v186_v35 = vmax.f32 %v180_v31, %v184_v33 }
 0x133   :  { %v187_v36 = vpack.c.bf16 %v186_v35, %v185_v34 }
 0x135   :  { %516 = vmatmul.mubr.bf16.vlgmr.msra.gmra.mrb[0].mxu1 %v187_v36 }
 0x208   :  { %v293_v41 = vpop.f32.mrb[0].mxu1 }
 0x209   :  { %v294_v42 = vadd.f32 %v434_v40, %v293_v41  ;;  %v517_v43 = vpop.f32.mrb[1].mxu1 }
 0x20a   :  { %v296_v44 = vpop.f32.mrb[2].mxu1 }
 0x20b   :  { %v300_v45 = vmul.f32 0.2, %v294_v42  ;;  %v297_v46 = vadd.f32 %v434_v40, %v296_v44  ;;  %v518_v47 = vpop.f32.mrb[3].mxu1 }
 0x20d   :  { %v301_v48 = vmul.f32 0.2, %v297_v46  ;;  %v302_v49 = vmax.f32 %v294_v42, %v300_v45 }
 0x20f   :  { %v303_v50 = vmax.f32 %v297_v46, %v301_v48 }
 0x211   :  { %v304_v51 = vpack.c.bf16 %v303_v50, %v302_v49 }
 0x213   :  { %536 = vmatmul.mubr.bf16.vlgmr.msra.gmra.mrb[4].mxu0 %v304_v51 }
 0x2e6   :  { %v410_v53 = vpop.f32.mrb[4].mxu0 }
 0x2e7   :  { %v411_v54 = vadd.f32 %v443_v52, %v410_v53  ;;  %v537_v55 = vpop.f32.mrb[5].mxu0 }
 0x2e8   :  { %v413_v56 = vpop.f32.mrb[6].mxu0 }
 0x2e9   :  { %417 = vst [vmem:[%s797_s7] sm:$0xff] %v411_v54  ;;  %v414_v57 = vadd.f32 %v443_v52, %v413_v56  ;;  %v538_v58 = vpop.f32.mrb[7].mxu0 }
 0x2eb   :  { %418 = vst [vmem:[%s797_s7 + $0x8] sm:$0xff] %v414_v57 }
 0x2ec   :  { %423 = vsyncpa [#allocation3], 1 }
 0x2ed   :  { %424 = vsyncpa [#allocation5], 1 }

</bundles_post_ra>
